<compile_context>
chip_gen: v5e
topology: v5e:2x2
jax: 0.10.0
libtpu: 0.0.40
codegen_flags: <defaults>
</compile_context>

<pallas_src>
import functools

import jax
import jax.numpy as jnp
from jax.experimental import pallas as pl
from jax.experimental.pallas import tpu as pltpu

_FOLD = 32          # samples folded into one 128-lane row (32 * 4 features)
_IN = 4
_HID = 3
_OUT = 2


def _round_up(n, m):
    return ((n + m - 1) // m) * m


def _cdiv(a, b):
    return -(-a // b)


def mlp_kernel(x_ref, w1_ref, b1_ref, w2_ref, b2_ref, o_ref):
    """One (R, 128) batch-row tile; whole MLP fused.

    x_ref : (R, 128)  VMEM  -- 32 samples x 4 features per row (native layout)
    w1_ref: (128, 96) VMEM  -- block-diag(32 x W1[4,3]),   resident
    b1_ref: (1, 96)   VMEM  -- tile(b1, 32),               resident
    w2_ref: (96, 64)  VMEM  -- block-diag(32 x W2[3,2]),   resident
    b2_ref: (1, 64)   VMEM  -- tile(b2, 32),               resident
    o_ref : (R, 64)   VMEM  -- 32 samples x 2 outputs per row (row-major (B,2))
    """
    x = x_ref[...].astype(jnp.float32)                               # (R, 128)
    h = jnp.dot(x, w1_ref[...], preferred_element_type=jnp.float32)  # (R, 96)
    h = jnp.maximum(h + b1_ref[...], 0.0)                            # ReLU
    y = jnp.dot(h, w2_ref[...], preferred_element_type=jnp.float32)  # (R, 64)
    o_ref[...] = (y + b2_ref[...]).astype(o_ref.dtype)               # one store


@functools.partial(jax.jit, static_argnames=("rows_per_block",))
def mynet_forward(x, w1, b1, w2, b2, *, rows_per_block=2048):
    """x: (B, 4) -> (B, 2). Weights stored [in, out].

    rows_per_block: max rows (of 32 samples each) per grid step.
      2048 rows == 65536 samples == ~1.5 MB HBM traffic per step.
    """
    B = x.shape[0]
    rows = _cdiv(B, _FOLD)

    # Grid sizing: big tiles, padding waste < 8 rows/step, >= 2 (even) steps
    # when there is enough work so v7x megacore can split the parallel axis.
    nsteps = max(1, _cdiv(rows, rows_per_block))
    if nsteps == 1 and rows > 64:
        nsteps = 2
    if nsteps > 1 and nsteps % 2:
        nsteps += 1
    R = _round_up(_cdiv(rows, nsteps), 8)       # rows per block (mult of 8)
    rows_pad = R * nsteps
    B_pad = rows_pad * _FOLD

    # Native-layout input; pad only the (small) ragged tail with zeros.
    xp = x if B_pad == B else jnp.zeros((B_pad, _IN), x.dtype).at[:B].set(x)
    x128 = xp.reshape(rows_pad, _FOLD * _IN)    # free, row-major contiguous

    # 32-way block-diagonal weights + tiled biases (tiny; resident in VMEM).
    w1b = jnp.kron(jnp.eye(_FOLD, dtype=w1.dtype), w1)        # (128, 96)
    w2b = jnp.kron(jnp.eye(_FOLD, dtype=w2.dtype), w2)        # (96, 64)
    b1b = jnp.tile(b1, _FOLD).reshape(1, _FOLD * _HID)        # (1, 96)
    b2b = jnp.tile(b2, _FOLD).reshape(1, _FOLD * _OUT)        # (1, 64)

    # VMEM budget: double-buffered I/O blocks + resident weights + headroom
    # for the (R, 96) intermediate the compiler materializes.
    in_blk = R * _FOLD * _IN * 4
    out_blk = R * _FOLD * _OUT * 4
    h_blk = R * _FOLD * _HID * 4
    w_bytes = (w1b.size + b1b.size + w2b.size + b2b.size) * 4
    need = 2 * (in_blk + out_blk) + 2 * h_blk + 2 * w_bytes + (2 << 20)
    vmem_limit = int(min(max(need, 16 << 20), 48 << 20))

    out = pl.pallas_call(
        mlp_kernel,
        out_shape=jax.ShapeDtypeStruct((rows_pad, _FOLD * _OUT), x.dtype),
        grid=(nsteps,),
        in_specs=[
            pl.BlockSpec((R, _FOLD * _IN), lambda i: (i, 0)),          # x tile
            pl.BlockSpec((_FOLD * _IN, _FOLD * _HID), lambda i: (0, 0)),  # W1big
            pl.BlockSpec((1, _FOLD * _HID), lambda i: (0, 0)),            # b1big
            pl.BlockSpec((_FOLD * _HID, _FOLD * _OUT), lambda i: (0, 0)),  # W2big
            pl.BlockSpec((1, _FOLD * _OUT), lambda i: (0, 0)),             # b2big
        ],
        out_specs=pl.BlockSpec((R, _FOLD * _OUT), lambda i: (i, 0)),
        compiler_params=pltpu.CompilerParams(
            dimension_semantics=("parallel",),
            vmem_limit_bytes=vmem_limit),
    )(x128, w1b, b1b, w2b, b2b)

    # (rows_pad, 64) is already row-major (B_pad, 2); just drop the pad rows.
    return out.reshape(B_pad, _OUT)[:B]


def init_params(key):
    """PyTorch nn.Linear default init: U(-1/sqrt(fan_in), 1/sqrt(fan_in))."""
    k1, k2, k3, k4 = jax.random.split(key, 4)
    bound1 = 1.0 / jnp.sqrt(4.0)   # layer_1 fan_in = 4
    bound2 = 1.0 / jnp.sqrt(3.0)   # layer_2 fan_in = 3
    w1 = jax.random.uniform(k1, (_IN, _HID), jnp.float32, -bound1, bound1)
    b1 = jax.random.uniform(k2, (_HID,), jnp.float32, -bound1, bound1)
    w2 = jax.random.uniform(k3, (_HID, _OUT), jnp.float32, -bound2, bound2)
    b2 = jax.random.uniform(k4, (_OUT,), jnp.float32, -bound2, bound2)
    return w1, b1, w2, b2


def _reference(x, w1, b1, w2, b2):
    return jnp.maximum(x @ w1 + b1, 0.0) @ w2 + b2


if __name__ == "__main__":
    key = jax.random.PRNGKey(0)
    kx, kx2, kp = jax.random.split(key, 3)
    w1, b1, w2, b2 = init_params(kp)

    # Small demo batch (single grid step).
    batch = 8
    x = jax.random.normal(kx, (batch, _IN), dtype=jnp.float32)
    out = jax.block_until_ready(mynet_forward(x, w1, b1, w2, b2))
    assert out.shape == (batch, _OUT)
    assert jnp.allclose(out, _reference(x, w1, b1, w2, b2), atol=1e-5, rtol=1e-5)

    # Ragged batch exercising multiple (even #) grid steps and padding
    # (rows_per_block shrunk just to force a multi-step grid at a small size).
    batch2 = 1029
    x2 = jax.random.normal(kx2, (batch2, _IN), dtype=jnp.float32)
    out2 = jax.block_until_ready(
        mynet_forward(x2, w1, b1, w2, b2, rows_per_block=8))
    assert out2.shape == (batch2, _OUT)
    assert jnp.allclose(out2, _reference(x2, w1, b1, w2, b2), atol=1e-5, rtol=1e-5)

    print("KERNEL_OK")
</pallas_src>

<mosaic_0001>
module attributes {stable_mosaic.version = 11 : i64} {
  func.func @mlp_kernel(%arg0: i32, %arg1: memref<8x128xf32, #tpu.memory_space<vmem>>, %arg2: memref<128x96xf32, #tpu.memory_space<vmem>>, %arg3: memref<1x96xf32, #tpu.memory_space<vmem>>, %arg4: memref<96x64xf32, #tpu.memory_space<vmem>>, %arg5: memref<1x64xf32, #tpu.memory_space<vmem>>, %arg6: memref<8x64xf32, #tpu.memory_space<vmem>>) attributes {dimension_semantics = [#tpu.dimension_semantics<parallel>], iteration_bounds = array<i64: 1>, scalar_prefetch = 0 : i64, scratch_operands = 0 : i64, tpu.core_type = #tpu.core_type<tc>, window_params = [{transform_indices = @transform_0, window_bounds = array<i64: 8, 128>}, {pipeline_mode = #tpu.pipeline_mode<synchronous>, transform_indices = @transform_1, window_bounds = array<i64: 128, 96>}, {pipeline_mode = #tpu.pipeline_mode<synchronous>, transform_indices = @transform_2, window_bounds = array<i64: 1, 96>}, {pipeline_mode = #tpu.pipeline_mode<synchronous>, transform_indices = @transform_3, window_bounds = array<i64: 96, 64>}, {pipeline_mode = #tpu.pipeline_mode<synchronous>, transform_indices = @transform_4, window_bounds = array<i64: 1, 64>}, {transform_indices = @transform_5, window_bounds = array<i64: 8, 64>}]} {
    %c0 = arith.constant 0 : index
    %c0_0 = arith.constant 0 : index
    %0 = vector.load %arg1[%c0, %c0_0] : memref<8x128xf32, #tpu.memory_space<vmem>>, vector<8x128xf32>
    %c0_1 = arith.constant 0 : index
    %c0_2 = arith.constant 0 : index
    %1 = vector.load %arg2[%c0_1, %c0_2] : memref<128x96xf32, #tpu.memory_space<vmem>>, vector<128x96xf32>
    %cst = arith.constant dense<0.000000e+00> : vector<8x96xf32>
    %2 = tpu.matmul %0, %1, %cst {dimension_numbers = #tpu.dot_dimension_numbers<[1], [0], [0], [1], [0, 0, 1, 1], [], []>} : vector<8x128xf32>, vector<128x96xf32>, vector<8x96xf32> -> vector<8x96xf32>
    %c0_3 = arith.constant 0 : index
    %c0_4 = arith.constant 0 : index
    %3 = vector.load %arg3[%c0_3, %c0_4] : memref<1x96xf32, #tpu.memory_space<vmem>>, vector<1x96xf32>
    %4 = vector.broadcast %3 : vector<1x96xf32> to vector<8x96xf32>
    %5 = arith.addf %2, %4 : vector<8x96xf32>
    %cst_5 = arith.constant 0.000000e+00 : f32
    %6 = vector.broadcast %cst_5 : f32 to vector<8x96xf32>
    %7 = arith.maximumf %5, %6 : vector<8x96xf32>
    %c0_6 = arith.constant 0 : index
    %c0_7 = arith.constant 0 : index
    %8 = vector.load %arg4[%c0_6, %c0_7] : memref<96x64xf32, #tpu.memory_space<vmem>>, vector<96x64xf32>
    %cst_8 = arith.constant dense<0.000000e+00> : vector<8x64xf32>
    %9 = tpu.matmul %7, %8, %cst_8 {dimension_numbers = #tpu.dot_dimension_numbers<[1], [0], [0], [1], [0, 0, 1, 1], [], []>} : vector<8x96xf32>, vector<96x64xf32>, vector<8x64xf32> -> vector<8x64xf32>
    %c0_9 = arith.constant 0 : index
    %c0_10 = arith.constant 0 : index
    %10 = vector.load %arg5[%c0_9, %c0_10] : memref<1x64xf32, #tpu.memory_space<vmem>>, vector<1x64xf32>
    %11 = vector.broadcast %10 : vector<1x64xf32> to vector<8x64xf32>
    %12 = arith.addf %9, %11 : vector<8x64xf32>
    %c0_11 = arith.constant 0 : index
    %c0_12 = arith.constant 0 : index
    %13 = vector.load %arg6[%c0_11, %c0_12] : memref<8x64xf32, #tpu.memory_space<vmem>>, vector<8x64xf32>
    tpu.vector_store %arg6[%c0_11, %c0_12], %12 {strides = array<i32>} : memref<8x64xf32, #tpu.memory_space<vmem>>, vector<8x64xf32>,
    return
  }
  func.func @transform_0(%arg0: i32) -> (i32, i32) {
    %c0_i32 = arith.constant 0 : i32
    %c0_i32_0 = arith.constant 0 : i32
    return %arg0, %c0_i32 : i32, i32
  }
  func.func @transform_1(%arg0: i32) -> (i32, i32) {
    %c0_i32 = arith.constant 0 : i32
    %c0_i32_0 = arith.constant 0 : i32
    %c0_i32_1 = arith.constant 0 : i32
    return %c0_i32, %c0_i32_0 : i32, i32
  }
  func.func @transform_2(%arg0: i32) -> (i32, i32) {
    %c0_i32 = arith.constant 0 : i32
    %c0_i32_0 = arith.constant 0 : i32
    %c0_i32_1 = arith.constant 0 : i32
    return %c0_i32, %c0_i32_0 : i32, i32
  }
  func.func @transform_3(%arg0: i32) -> (i32, i32) {
    %c0_i32 = arith.constant 0 : i32
    %c0_i32_0 = arith.constant 0 : i32
    %c0_i32_1 = arith.constant 0 : i32
    return %c0_i32, %c0_i32_0 : i32, i32
  }
  func.func @transform_4(%arg0: i32) -> (i32, i32) {
    %c0_i32 = arith.constant 0 : i32
    %c0_i32_0 = arith.constant 0 : i32
    %c0_i32_1 = arith.constant 0 : i32
    return %c0_i32, %c0_i32_0 : i32, i32
  }
  func.func @transform_5(%arg0: i32) -> (i32, i32) {
    %c0_i32 = arith.constant 0 : i32
    %c0_i32_0 = arith.constant 0 : i32
    return %arg0, %c0_i32 : i32, i32
  }
}

</mosaic_0001>

<bundles_post_ra>
// kernel: tile.13
= control target key start
LH: loop header
LB: loop body
LE: loop exit
PB: predicated region body
PF: predicated region fallthrough
CT: control target
= control target key end

     0   :  { %s40_s0 = inlined_call_operand.vmem [shape: f32[3], index: 0, kind: input, shape index: {}]   ;;  %s41_s1 = inlined_call_operand.vmem [shape: f32[32,3], index: 1, kind: output, shape index: {}]  }
   0x1   :  { %v4_v0 = vld [vmem:[%s40_s0] ss:$0 sm:$0xff] }
   0x2   :  { %5 = vst [vmem:[%s41_s1] sm:$0xff] %v4_v0 }
   0x3   :  { %12 = vst [vmem:[%s41_s1 + $0x8] sm:$0xff] %v4_v0 }
   0x4   :  { %13 = vst [vmem:[%s41_s1 + $0x10] sm:$0xff] %v4_v0 }
   0x5   :  { %14 = vst [vmem:[%s41_s1 + $0x18] sm:$0xff] %v4_v0 }

// kernel: tile.14
= control target key start
LH: loop header
LB: loop body
LE: loop exit
PB: predicated region body
PF: predicated region fallthrough
CT: control target
= control target key end

     0   :  { %s259_s10 = smov 93   ;;  %s260_s11 = smov 87   ;;  %vm3_vm0 = vcmask 23552   ;;  %vm9_vm1 = vcmask 786152   ;;  %vm15_vm2 = vcmask 761552   ;;  %vm21_vm3 = vcmask 736952   ;;  %s399_s0 = inlined_call_operand.vmem [shape: f32[32,3], index: 0, kind: input, shape index: {}]   ;;  %s400_s1 = inlined_call_operand.vmem [shape: f32[1,96], index: 1, kind: output, shape index: {}]  }
   0x1   :  { %v197_v0 = vld [vmem:[%s399_s0 + $0x1f] sm:$0x1]   ;;  %v199_v1 = vld [vmem:[%s399_s0 + $0x1d] sm:$0x1]   ;;  %v201_v2 = vld [vmem:[%s399_s0 + $0x1b] sm:$0x1]  }
   0x2   :  { %7 = vrot.lane.b32.xlu0 %v197_v0, %s259_s10  ;;  %19 = vrot.lane.b32.xlu1 %v199_v1, %s260_s11  ;;  %s261_s14 = smov 81   ;;  %v198_v3 = vld [vmem:[%s399_s0 + $0x1e] sm:$0x1]   ;;  %v200_v4 = vld [vmem:[%s399_s0 + $0x1c] sm:$0x1]   ;;  %s262_s19 = smov 90  }
   0x3   :  { %31 = vrot.lane.b32.xlu2 %v201_v2, %s261_s14  ;;  %s263_s20 = smov 84   ;;  %v202_v5 = vld [vmem:[%s399_s0 + $0x1a] sm:$0x1]   ;;  %s264_s23 = smov 78   ;;  %v203_v6 = vld [vmem:[%s399_s0 + $0x19] sm:$0x1]  }
   0x4   :  { %v204_v7 = vld [vmem:[%s399_s0 + $0x18] sm:$0x1]   ;;  %s265_s28 = smov 75   ;;  %s266_s29 = smov 72   ;;  %v205_v8 = vld [vmem:[%s399_s0 + $0x17] sm:$0x1]  }
   0x5   :  { %s267_s3 = smov 69   ;;  %v206_v9 = vld [vmem:[%s399_s0 + $0x16] sm:$0x1]   ;;  %v207_v10 = vld [vmem:[%s399_s0 + $0x15] sm:$0x1]   ;;  %s268_s8 = smov 66  }
   0x6   :  { %s269_s9 = smov 63   ;;  %v208_v11 = vld [vmem:[%s399_s0 + $0x14] sm:$0x1]   ;;  %s270_s12 = smov 60   ;;  %v209_v12 = vld [vmem:[%s399_s0 + $0x13] sm:$0x1]  }
   0x7   :  { %v210_v13 = vld [vmem:[%s399_s0 + $0x12] sm:$0x1]   ;;  %s271_s17 = smov 57   ;;  %s272_s18 = smov 54   ;;  %v211_v14 = vld [vmem:[%s399_s0 + $0x11] sm:$0x1]  }
   0x8   :  { %s273_s21 = smov 51   ;;  %v212_v15 = vld [vmem:[%s399_s0 + $0x10] sm:$0x1]   ;;  %v213_v16 = vld [vmem:[%s399_s0 + $0xf] sm:$0x1]   ;;  %s274_s26 = smov 48  }
   0x9   :  { %s275_s27 = smov 45   ;;  %v214_v17 = vld [vmem:[%s399_s0 + $0xe] sm:$0x1]   ;;  %s276_s30 = smov 42   ;;  %v215_v18 = vld [vmem:[%s399_s0 + $0xd] sm:$0x1]  }
   0xa   :  { %13 = vrot.lane.b32.xlu0 %v198_v3, %s262_s19  ;;  %25 = vrot.lane.b32.xlu1 %v200_v4, %s263_s20  ;;  %v216_v19 = vld [vmem:[%s399_s0 + $0xc] sm:$0x1]   ;;  %s277_s6 = smov 39   ;;  %s278_s7 = smov 36   ;;  %v217_v20 = vld [vmem:[%s399_s0 + $0xb] sm:$0x1]  }
   0xb   :  { %37 = vrot.lane.b32.xlu2 %v202_v5, %s264_s23  ;;  %s279_s10 = smov 33   ;;  %v218_v21 = vld [vmem:[%s399_s0 + $0xa] sm:$0x1]   ;;  %v219_v22 = vld [vmem:[%s399_s0 + $0x9] sm:$0x1]   ;;  %s280_s15 = smov 30  }
   0xc   :  { %s281_s16 = smov 27   ;;  %v220_v23 = vld [vmem:[%s399_s0 + $0x8] sm:$0x1]   ;;  %s282_s19 = smov 24   ;;  %v221_v24 = vld [vmem:[%s399_s0 + $0x7] sm:$0x1]  }
   0xd   :  { %v222_v25 = vld [vmem:[%s399_s0 + $0x6] sm:$0x1]   ;;  %s283_s24 = smov 21   ;;  %s284_s25 = smov 18   ;;  %v223_v26 = vld [vmem:[%s399_s0 + $0x5] sm:$0x1]  }
   0xe   :  { %v224_v27 = vld [vmem:[%s399_s0 + $0x4] sm:$0x1]   ;;  %v225_v28 = vld [vmem:[%s399_s0 + $0x3] sm:$0x1]   ;;  %s286_s4 = smov 12   ;;  %s287_s5 = smov 9  }
   0xf   :  { %v226_v29 = vld [vmem:[%s399_s0 + $0x2] sm:$0x1]   ;;  %v227_v30 = vld [vmem:[%s399_s0 + $0x1] sm:$0x1]   ;;  %s289_s11 = smov 3   ;;  %vm27_vm4 = vcmask 712352  }
  0x10   :  { %v2_v31 = vld [vmem:[%s399_s0] sm:$0x1]   ;;  %vm33_vm5 = vcmask 687752   ;;  %vm39_vm6 = vcmask 663152   ;;  %vm45_vm7 = vcmask 638552   ;;  %vm51_vm8 = vcmask 613952  }
  0x11   :  { %4 = vst.msk [vmem:[#allocation0] sm:$0x1] %vm3_vm0, %v2_v31   ;;  %vm57_vm9 = vcmask 589352   ;;  %vm63_vm10 = vcmask 564752   ;;  %vm69_vm11 = vcmask 540152   ;;  %vm75_vm12 = vcmask 515552  }
  0x12   :  { %43 = vrot.lane.b32.xlu0 %v203_v6, %s265_s28  ;;  %49 = vrot.lane.b32.xlu1 %v204_v7, %s266_s29  ;;  %s285_s28 = smov 15   ;;  %vm81_vm13 = vcmask 490952   ;;  %vm87_vm14 = vcmask 466352   ;;  %vm93_vm15 = vcmask 441752   ;;  %vm99_vm0 = vcmask 417152  }
  0x13   :  { %55 = vrot.lane.b32.xlu2 %v205_v8, %s267_s3 }
  0x1a   :  { %61 = vrot.lane.b32.xlu0 %v206_v9, %s268_s8  ;;  %67 = vrot.lane.b32.xlu1 %v207_v10, %s269_s9  ;;  %s288_s8 = smov 6  }
  0x1b   :  { %73 = vrot.lane.b32.xlu2 %v208_v11, %s270_s12 }
  0x22   :  { %79 = vrot.lane.b32.xlu0 %v209_v12, %s271_s17  ;;  %85 = vrot.lane.b32.xlu1 %v210_v13, %s272_s18 }
  0x23   :  { %91 = vrot.lane.b32.xlu2 %v211_v14, %s273_s21 }
  0x2a   :  { %97 = vrot.lane.b32.xlu0 %v212_v15, %s274_s26  ;;  %103 = vrot.lane.b32.xlu1 %v213_v16, %s275_s27 }
  0x2b   :  { %109 = vrot.lane.b32.xlu2 %v214_v17, %s276_s30 }
  0x32   :  { %115 = vrot.lane.b32.xlu0 %v215_v18, %s277_s6  ;;  %121 = vrot.lane.b32.xlu1 %v216_v19, %s278_s7 }
  0x33   :  { %127 = vrot.lane.b32.xlu2 %v217_v20, %s279_s10 }
  0x3a   :  { %133 = vrot.lane.b32.xlu0 %v218_v21, %s280_s15  ;;  %139 = vrot.lane.b32.xlu1 %v219_v22, %s281_s16 }
  0x3b   :  { %145 = vrot.lane.b32.xlu2 %v220_v23, %s282_s19 }
  0x42   :  { %151 = vrot.lane.b32.xlu0 %v221_v24, %s283_s24  ;;  %157 = vrot.lane.b32.xlu1 %v222_v25, %s284_s25 }
  0x43   :  { %163 = vrot.lane.b32.xlu2 %v223_v26, %s285_s28 }
  0x4a   :  { %169 = vrot.lane.b32.xlu0 %v224_v27, %s286_s4  ;;  %175 = vrot.lane.b32.xlu1 %v225_v28, %s287_s5 }
  0x4b   :  { %181 = vrot.lane.b32.xlu2 %v226_v29, %s288_s8 }
  0x52   :  { %187 = vrot.lane.b32.xlu0 %v227_v30, %s289_s11 }
  0x5d   :  { %v32_v32 = vpop.permute.xlu2 %31  }
  0x65   :  { %v38_v33 = vpop.permute.xlu2 %37  }
  0x6d   :  { %v56_v34 = vpop.permute.xlu2 %55  }
  0x74   :  { %v8_v35 = vpop.permute.xlu0 %7   ;;  %v20_v36 = vpop.permute.xlu1 %19  }
  0x75   :  { %10 = vst.msk [vmem:[#allocation0] sm:$0x1] %vm9_vm1, %v8_v35   ;;  %v74_v37 = vpop.permute.xlu2 %73   ;;  %vm105_vm1 = vcmask 392552  }
  0x7c   :  { %v14_v38 = vpop.permute.xlu0 %13   ;;  %v26_v39 = vpop.permute.xlu1 %25  }
  0x7d   :  { %16 = vst.msk [vmem:[#allocation0] sm:$0x1] %vm15_vm2, %v14_v38   ;;  %v92_v40 = vpop.permute.xlu2 %91   ;;  %vm111_vm2 = vcmask 367952  }
  0x7e   :  { %22 = vst.msk [vmem:[#allocation0] sm:$0x1] %vm21_vm3, %v20_v36   ;;  %vm117_vm3 = vcmask 343352  }
  0x7f   :  { %28 = vst.msk [vmem:[#allocation0] sm:$0x1] %vm27_vm4, %v26_v39   ;;  %vm123_vm4 = vcmask 318752  }
  0x80   :  { %34 = vst.msk [vmem:[#allocation0] sm:$0x1] %vm33_vm5, %v32_v32   ;;  %vm129_vm5 = vcmask 294152  }
  0x81   :  { %40 = vst.msk [vmem:[#allocation0] sm:$0x1] %vm39_vm6, %v38_v33   ;;  %vm135_vm6 = vcmask 269552  }
  0x84   :  { %v44_v41 = vpop.permute.xlu0 %43   ;;  %v50_v42 = vpop.permute.xlu1 %49  }
  0x85   :  { %46 = vst.msk [vmem:[#allocation0] sm:$0x1] %vm45_vm7, %v44_v41   ;;  %v110_v43 = vpop.permute.xlu2 %109   ;;  %vm141_vm7 = vcmask 244952  }
  0x86   :  { %52 = vst.msk [vmem:[#allocation0] sm:$0x1] %vm51_vm8, %v50_v42   ;;  %vm147_vm8 = vcmask 220352  }
  0x87   :  { %58 = vst.msk [vmem:[#allocation0] sm:$0x1] %vm57_vm9, %v56_v34   ;;  %vm153_vm9 = vcmask 195752  }
  0x8c   :  { %v62_v44 = vpop.permute.xlu0 %61   ;;  %v68_v45 = vpop.permute.xlu1 %67  }
  0x8d   :  { %64 = vst.msk [vmem:[#allocation0] sm:$0x1] %vm63_vm10, %v62_v44   ;;  %v128_v46 = vpop.permute.xlu2 %127   ;;  %vm159_vm10 = vcmask 171152  }
  0x8e   :  { %70 = vst.msk [vmem:[#allocation0] sm:$0x1] %vm69_vm11, %v68_v45   ;;  %vm165_vm11 = vcmask 146552  }
  0x8f   :  { %76 = vst.msk [vmem:[#allocation0] sm:$0x1] %vm75_vm12, %v74_v37   ;;  %vm171_vm12 = vcmask 121952  }
  0x94   :  { %v80_v47 = vpop.permute.xlu0 %79   ;;  %v86_v48 = vpop.permute.xlu1 %85  }
  0x95   :  { %82 = vst.msk [vmem:[#allocation0] sm:$0x1] %vm81_vm13, %v80_v47   ;;  %v146_v49 = vpop.permute.xlu2 %145   ;;  %vm177_vm13 = vcmask 97352  }
  0x96   :  { %88 = vst.msk [vmem:[#allocation0] sm:$0x1] %vm87_vm14, %v86_v48   ;;  %vm183_vm14 = vcmask 72752  }
  0x97   :  { %94 = vst.msk [vmem:[#allocation0] sm:$0x1] %vm93_vm15, %v92_v40   ;;  %vm189_vm15 = vcmask 48152  }
  0x9c   :  { %v98_v50 = vpop.permute.xlu0 %97   ;;  %v104_v51 = vpop.permute.xlu1 %103  }
  0x9d   :  { %100 = vst.msk [vmem:[#allocation0] sm:$0x1] %vm99_vm0, %v98_v50   ;;  %v164_v52 = vpop.permute.xlu2 %163  }
  0x9e   :  { %106 = vst.msk [vmem:[#allocation0] sm:$0x1] %vm105_vm1, %v104_v51  }
  0x9f   :  { %112 = vst.msk [vmem:[#allocation0] sm:$0x1] %vm111_vm2, %v110_v43  }
  0xa4   :  { %v116_v53 = vpop.permute.xlu0 %115   ;;  %v122_v54 = vpop.permute.xlu1 %121  }
  0xa5   :  { %118 = vst.msk [vmem:[#allocation0] sm:$0x1] %vm117_vm3, %v116_v53   ;;  %v182_v55 = vpop.permute.xlu2 %181  }
  0xa6   :  { %124 = vst.msk [vmem:[#allocation0] sm:$0x1] %vm123_vm4, %v122_v54  }
  0xa7   :  { %130 = vst.msk [vmem:[#allocation0] sm:$0x1] %vm129_vm5, %v128_v46  }
  0xac   :  { %v134_v56 = vpop.permute.xlu0 %133   ;;  %v140_v57 = vpop.permute.xlu1 %139  }
  0xad   :  { %136 = vst.msk [vmem:[#allocation0] sm:$0x1] %vm135_vm6, %v134_v56  }
  0xae   :  { %142 = vst.msk [vmem:[#allocation0] sm:$0x1] %vm141_vm7, %v140_v57  }
  0xaf   :  { %148 = vst.msk [vmem:[#allocation0] sm:$0x1] %vm147_vm8, %v146_v49  }
  0xb4   :  { %v152_v58 = vpop.permute.xlu0 %151   ;;  %v158_v59 = vpop.permute.xlu1 %157  }
  0xb5   :  { %154 = vst.msk [vmem:[#allocation0] sm:$0x1] %vm153_vm9, %v152_v58  }
  0xb6   :  { %160 = vst.msk [vmem:[#allocation0] sm:$0x1] %vm159_vm10, %v158_v59  }
  0xb7   :  { %166 = vst.msk [vmem:[#allocation0] sm:$0x1] %vm165_vm11, %v164_v52  }
  0xbc   :  { %v170_v60 = vpop.permute.xlu0 %169   ;;  %v176_v61 = vpop.permute.xlu1 %175  }
  0xbd   :  { %172 = vst.msk [vmem:[#allocation0] sm:$0x1] %vm171_vm12, %v170_v60  }
  0xbe   :  { %178 = vst.msk [vmem:[#allocation0] sm:$0x1] %vm177_vm13, %v176_v61  }
  0xbf   :  { %184 = vst.msk [vmem:[#allocation0] sm:$0x1] %vm183_vm14, %v182_v55  }
  0xc4   :  { %v188_v62 = vpop.permute.xlu0 %187  }
  0xc5   :  { %190 = vst.msk [vmem:[#allocation0] sm:$0x1] %vm189_vm15, %v188_v62  }
  0xcc   :  { %v193_v63 = vld [vmem:[#allocation0] sm:$0x1] }
  0xcd   :  { %196 = vst [vmem:[%s400_s1] sm:$0x1] %v193_v63 }

// kernel: tile.18
= control target key start
LH: loop header
LB: loop body
LE: loop exit
PB: predicated region body
PF: predicated region fallthrough
CT: control target
= control target key end

     0   :  { %s40_s0 = inlined_call_operand.vmem [shape: f32[2], index: 0, kind: input, shape index: {}]   ;;  %s41_s1 = inlined_call_operand.vmem [shape: f32[32,2], index: 1, kind: output, shape index: {}]  }
   0x1   :  { %v4_v0 = vld [vmem:[%s40_s0] ss:$0 sm:$0xff] }
   0x2   :  { %5 = vst [vmem:[%s41_s1] sm:$0xff] %v4_v0 }
   0x3   :  { %12 = vst [vmem:[%s41_s1 + $0x8] sm:$0xff] %v4_v0 }
   0x4   :  { %13 = vst [vmem:[%s41_s1 + $0x10] sm:$0xff] %v4_v0 }
   0x5   :  { %14 = vst [vmem:[%s41_s1 + $0x18] sm:$0xff] %v4_v0 }

// kernel: tile.19
= control target key start
LH: loop header
LB: loop body
LE: loop exit
PB: predicated region body
PF: predicated region fallthrough
CT: control target
= control target key end

     0   :  { %s259_s10 = smov 62   ;;  %s260_s11 = smov 58   ;;  %vm3_vm0 = vcmask 15360   ;;  %vm9_vm1 = vcmask 523760   ;;  %vm15_vm2 = vcmask 507360   ;;  %vm21_vm3 = vcmask 490960   ;;  %s399_s0 = inlined_call_operand.vmem [shape: f32[32,2], index: 0, kind: input, shape index: {}]   ;;  %s400_s1 = inlined_call_operand.vmem [shape: f32[1,64], index: 1, kind: output, shape index: {}]  }
   0x1   :  { %v197_v0 = vld [vmem:[%s399_s0 + $0x1f] sm:$0x1]   ;;  %v199_v1 = vld [vmem:[%s399_s0 + $0x1d] sm:$0x1]   ;;  %v201_v2 = vld [vmem:[%s399_s0 + $0x1b] sm:$0x1]  }
   0x2   :  { %7 = vrot.lane.b32.xlu0 %v197_v0, %s259_s10  ;;  %19 = vrot.lane.b32.xlu1 %v199_v1, %s260_s11  ;;  %s261_s14 = smov 54   ;;  %v198_v3 = vld [vmem:[%s399_s0 + $0x1e] sm:$0x1]   ;;  %v200_v4 = vld [vmem:[%s399_s0 + $0x1c] sm:$0x1]   ;;  %s262_s19 = smov 60  }
   0x3   :  { %31 = vrot.lane.b32.xlu2 %v201_v2, %s261_s14  ;;  %s263_s20 = smov 56   ;;  %v202_v5 = vld [vmem:[%s399_s0 + $0x1a] sm:$0x1]   ;;  %s264_s23 = smov 52   ;;  %v203_v6 = vld [vmem:[%s399_s0 + $0x19] sm:$0x1]  }
   0x4   :  { %v204_v7 = vld [vmem:[%s399_s0 + $0x18] sm:$0x1]   ;;  %s265_s28 = smov 50   ;;  %s266_s29 = smov 48   ;;  %v205_v8 = vld [vmem:[%s399_s0 + $0x17] sm:$0x1]  }
   0x5   :  { %s267_s3 = smov 46   ;;  %v206_v9 = vld [vmem:[%s399_s0 + $0x16] sm:$0x1]   ;;  %v207_v10 = vld [vmem:[%s399_s0 + $0x15] sm:$0x1]   ;;  %s268_s8 = smov 44  }
   0x6   :  { %s269_s9 = smov 42   ;;  %v208_v11 = vld [vmem:[%s399_s0 + $0x14] sm:$0x1]   ;;  %s270_s12 = smov 40   ;;  %v209_v12 = vld [vmem:[%s399_s0 + $0x13] sm:$0x1]  }
   0x7   :  { %v210_v13 = vld [vmem:[%s399_s0 + $0x12] sm:$0x1]   ;;  %s271_s17 = smov 38   ;;  %s272_s18 = smov 36   ;;  %v211_v14 = vld [vmem:[%s399_s0 + $0x11] sm:$0x1]  }
   0x8   :  { %s273_s21 = smov 34   ;;  %v212_v15 = vld [vmem:[%s399_s0 + $0x10] sm:$0x1]   ;;  %v213_v16 = vld [vmem:[%s399_s0 + $0xf] sm:$0x1]   ;;  %s274_s26 = smov 32  }
   0x9   :  { %s275_s27 = smov 30   ;;  %v214_v17 = vld [vmem:[%s399_s0 + $0xe] sm:$0x1]   ;;  %s276_s30 = smov 28   ;;  %v215_v18 = vld [vmem:[%s399_s0 + $0xd] sm:$0x1]  }
   0xa   :  { %13 = vrot.lane.b32.xlu0 %v198_v3, %s262_s19  ;;  %25 = vrot.lane.b32.xlu1 %v200_v4, %s263_s20  ;;  %v216_v19 = vld [vmem:[%s399_s0 + $0xc] sm:$0x1]   ;;  %s277_s6 = smov 26   ;;  %s278_s7 = smov 24   ;;  %v217_v20 = vld [vmem:[%s399_s0 + $0xb] sm:$0x1]  }
   0xb   :  { %37 = vrot.lane.b32.xlu2 %v202_v5, %s264_s23  ;;  %s279_s10 = smov 22   ;;  %v218_v21 = vld [vmem:[%s399_s0 + $0xa] sm:$0x1]   ;;  %v219_v22 = vld [vmem:[%s399_s0 + $0x9] sm:$0x1]   ;;  %s280_s15 = smov 20  }
   0xc   :  { %s281_s16 = smov 18   ;;  %v220_v23 = vld [vmem:[%s399_s0 + $0x8] sm:$0x1]   ;;  %s282_s19 = smov 16   ;;  %v221_v24 = vld [vmem:[%s399_s0 + $0x7] sm:$0x1]  }
   0xd   :  { %v222_v25 = vld [vmem:[%s399_s0 + $0x6] sm:$0x1]   ;;  %s283_s24 = smov 14   ;;  %s284_s25 = smov 12   ;;  %v223_v26 = vld [vmem:[%s399_s0 + $0x5] sm:$0x1]  }
   0xe   :  { %v224_v27 = vld [vmem:[%s399_s0 + $0x4] sm:$0x1]   ;;  %v225_v28 = vld [vmem:[%s399_s0 + $0x3] sm:$0x1]   ;;  %s286_s4 = smov 8   ;;  %s287_s5 = smov 6  }
   0xf   :  { %v226_v29 = vld [vmem:[%s399_s0 + $0x2] sm:$0x1]   ;;  %v227_v30 = vld [vmem:[%s399_s0 + $0x1] sm:$0x1]   ;;  %s289_s11 = smov 2   ;;  %vm27_vm4 = vcmask 474560  }
  0x10   :  { %v2_v31 = vld [vmem:[%s399_s0] sm:$0x1]   ;;  %vm33_vm5 = vcmask 458160   ;;  %vm39_vm6 = vcmask 441760   ;;  %vm45_vm7 = vcmask 425360   ;;  %vm51_vm8 = vcmask 408960  }
  0x11   :  { %4 = vst.msk [vmem:[#allocation0] sm:$0x1] %vm3_vm0, %v2_v31   ;;  %vm57_vm9 = vcmask 392560   ;;  %vm63_vm10 = vcmask 376160   ;;  %vm69_vm11 = vcmask 359760   ;;  %vm75_vm12 = vcmask 343360  }
  0x12   :  { %43 = vrot.lane.b32.xlu0 %v203_v6, %s265_s28  ;;  %49 = vrot.lane.b32.xlu1 %v204_v7, %s266_s29  ;;  %s285_s28 = smov 10   ;;  %vm81_vm13 = vcmask 326960   ;;  %vm87_vm14 = vcmask 310560   ;;  %vm93_vm15 = vcmask 294160   ;;  %vm99_vm0 = vcmask 277760  }
  0x13   :  { %55 = vrot.lane.b32.xlu2 %v205_v8, %s267_s3 }
  0x1a   :  { %61 = vrot.lane.b32.xlu0 %v206_v9, %s268_s8  ;;  %67 = vrot.lane.b32.xlu1 %v207_v10, %s269_s9  ;;  %s288_s8 = smov 4  }
  0x1b   :  { %73 = vrot.lane.b32.xlu2 %v208_v11, %s270_s12 }
  0x22   :  { %79 = vrot.lane.b32.xlu0 %v209_v12, %s271_s17  ;;  %85 = vrot.lane.b32.xlu1 %v210_v13, %s272_s18 }
  0x23   :  { %91 = vrot.lane.b32.xlu2 %v211_v14, %s273_s21 }
  0x2a   :  { %97 = vrot.lane.b32.xlu0 %v212_v15, %s274_s26  ;;  %103 = vrot.lane.b32.xlu1 %v213_v16, %s275_s27 }
  0x2b   :  { %109 = vrot.lane.b32.xlu2 %v214_v17, %s276_s30 }
  0x32   :  { %115 = vrot.lane.b32.xlu0 %v215_v18, %s277_s6  ;;  %121 = vrot.lane.b32.xlu1 %v216_v19, %s278_s7 }
  0x33   :  { %127 = vrot.lane.b32.xlu2 %v217_v20, %s279_s10 }
  0x3a   :  { %133 = vrot.lane.b32.xlu0 %v218_v21, %s280_s15  ;;  %139 = vrot.lane.b32.xlu1 %v219_v22, %s281_s16 }
  0x3b   :  { %145 = vrot.lane.b32.xlu2 %v220_v23, %s282_s19 }
  0x42   :  { %151 = vrot.lane.b32.xlu0 %v221_v24, %s283_s24  ;;  %157 = vrot.lane.b32.xlu1 %v222_v25, %s284_s25 }
  0x43   :  { %163 = vrot.lane.b32.xlu2 %v223_v26, %s285_s28 }
  0x4a   :  { %169 = vrot.lane.b32.xlu0 %v224_v27, %s286_s4  ;;  %175 = vrot.lane.b32.xlu1 %v225_v28, %s287_s5 }
  0x4b   :  { %181 = vrot.lane.b32.xlu2 %v226_v29, %s288_s8 }
  0x52   :  { %187 = vrot.lane.b32.xlu0 %v227_v30, %s289_s11 }
  0x5d   :  { %v32_v32 = vpop.permute.xlu2 %31  }
  0x65   :  { %v38_v33 = vpop.permute.xlu2 %37  }
  0x6d   :  { %v56_v34 = vpop.permute.xlu2 %55  }
  0x74   :  { %v8_v35 = vpop.permute.xlu0 %7   ;;  %v20_v36 = vpop.permute.xlu1 %19  }
  0x75   :  { %10 = vst.msk [vmem:[#allocation0] sm:$0x1] %vm9_vm1, %v8_v35   ;;  %v74_v37 = vpop.permute.xlu2 %73   ;;  %vm105_vm1 = vcmask 261360  }
  0x7c   :  { %v14_v38 = vpop.permute.xlu0 %13   ;;  %v26_v39 = vpop.permute.xlu1 %25  }
  0x7d   :  { %16 = vst.msk [vmem:[#allocation0] sm:$0x1] %vm15_vm2, %v14_v38   ;;  %v92_v40 = vpop.permute.xlu2 %91   ;;  %vm111_vm2 = vcmask 244960  }
  0x7e   :  { %22 = vst.msk [vmem:[#allocation0] sm:$0x1] %vm21_vm3, %v20_v36   ;;  %vm117_vm3 = vcmask 228560  }
  0x7f   :  { %28 = vst.msk [vmem:[#allocation0] sm:$0x1] %vm27_vm4, %v26_v39   ;;  %vm123_vm4 = vcmask 212160  }
  0x80   :  { %34 = vst.msk [vmem:[#allocation0] sm:$0x1] %vm33_vm5, %v32_v32   ;;  %vm129_vm5 = vcmask 195760  }
  0x81   :  { %40 = vst.msk [vmem:[#allocation0] sm:$0x1] %vm39_vm6, %v38_v33   ;;  %vm135_vm6 = vcmask 179360  }
  0x84   :  { %v44_v41 = vpop.permute.xlu0 %43   ;;  %v50_v42 = vpop.permute.xlu1 %49  }
  0x85   :  { %46 = vst.msk [vmem:[#allocation0] sm:$0x1] %vm45_vm7, %v44_v41   ;;  %v110_v43 = vpop.permute.xlu2 %109   ;;  %vm141_vm7 = vcmask 162960  }
  0x86   :  { %52 = vst.msk [vmem:[#allocation0] sm:$0x1] %vm51_vm8, %v50_v42   ;;  %vm147_vm8 = vcmask 146560  }
  0x87   :  { %58 = vst.msk [vmem:[#allocation0] sm:$0x1] %vm57_vm9, %v56_v34   ;;  %vm153_vm9 = vcmask 130160  }
  0x8c   :  { %v62_v44 = vpop.permute.xlu0 %61   ;;  %v68_v45 = vpop.permute.xlu1 %67  }
  0x8d   :  { %64 = vst.msk [vmem:[#allocation0] sm:$0x1] %vm63_vm10, %v62_v44   ;;  %v128_v46 = vpop.permute.xlu2 %127   ;;  %vm159_vm10 = vcmask 113760  }
  0x8e   :  { %70 = vst.msk [vmem:[#allocation0] sm:$0x1] %vm69_vm11, %v68_v45   ;;  %vm165_vm11 = vcmask 97360  }
  0x8f   :  { %76 = vst.msk [vmem:[#allocation0] sm:$0x1] %vm75_vm12, %v74_v37   ;;  %vm171_vm12 = vcmask 80960  }
  0x94   :  { %v80_v47 = vpop.permute.xlu0 %79   ;;  %v86_v48 = vpop.permute.xlu1 %85  }
  0x95   :  { %82 = vst.msk [vmem:[#allocation0] sm:$0x1] %vm81_vm13, %v80_v47   ;;  %v146_v49 = vpop.permute.xlu2 %145   ;;  %vm177_vm13 = vcmask 64560  }
  0x96   :  { %88 = vst.msk [vmem:[#allocation0] sm:$0x1] %vm87_vm14, %v86_v48   ;;  %vm183_vm14 = vcmask 48160  }
  0x97   :  { %94 = vst.msk [vmem:[#allocation0] sm:$0x1] %vm93_vm15, %v92_v40   ;;  %vm189_vm15 = vcmask 31760  }
  0x9c   :  { %v98_v50 = vpop.permute.xlu0 %97   ;;  %v104_v51 = vpop.permute.xlu1 %103  }
  0x9d   :  { %100 = vst.msk [vmem:[#allocation0] sm:$0x1] %vm99_vm0, %v98_v50   ;;  %v164_v52 = vpop.permute.xlu2 %163  }
  0x9e   :  { %106 = vst.msk [vmem:[#allocation0] sm:$0x1] %vm105_vm1, %v104_v51  }
  0x9f   :  { %112 = vst.msk [vmem:[#allocation0] sm:$0x1] %vm111_vm2, %v110_v43  }
  0xa4   :  { %v116_v53 = vpop.permute.xlu0 %115   ;;  %v122_v54 = vpop.permute.xlu1 %121  }
  0xa5   :  { %118 = vst.msk [vmem:[#allocation0] sm:$0x1] %vm117_vm3, %v116_v53   ;;  %v182_v55 = vpop.permute.xlu2 %181  }
  0xa6   :  { %124 = vst.msk [vmem:[#allocation0] sm:$0x1] %vm123_vm4, %v122_v54  }
  0xa7   :  { %130 = vst.msk [vmem:[#allocation0] sm:$0x1] %vm129_vm5, %v128_v46  }
  0xac   :  { %v134_v56 = vpop.permute.xlu0 %133   ;;  %v140_v57 = vpop.permute.xlu1 %139  }
  0xad   :  { %136 = vst.msk [vmem:[#allocation0] sm:$0x1] %vm135_vm6, %v134_v56  }
  0xae   :  { %142 = vst.msk [vmem:[#allocation0] sm:$0x1] %vm141_vm7, %v140_v57  }
  0xaf   :  { %148 = vst.msk [vmem:[#allocation0] sm:$0x1] %vm147_vm8, %v146_v49  }
  0xb4   :  { %v152_v58 = vpop.permute.xlu0 %151   ;;  %v158_v59 = vpop.permute.xlu1 %157  }
  0xb5   :  { %154 = vst.msk [vmem:[#allocation0] sm:$0x1] %vm153_vm9, %v152_v58  }
  0xb6   :  { %160 = vst.msk [vmem:[#allocation0] sm:$0x1] %vm159_vm10, %v158_v59  }
  0xb7   :  { %166 = vst.msk [vmem:[#allocation0] sm:$0x1] %vm165_vm11, %v164_v52  }
  0xbc   :  { %v170_v60 = vpop.permute.xlu0 %169   ;;  %v176_v61 = vpop.permute.xlu1 %175  }
  0xbd   :  { %172 = vst.msk [vmem:[#allocation0] sm:$0x1] %vm171_vm12, %v170_v60  }
  0xbe   :  { %178 = vst.msk [vmem:[#allocation0] sm:$0x1] %vm177_vm13, %v176_v61  }
  0xbf   :  { %184 = vst.msk [vmem:[#allocation0] sm:$0x1] %vm183_vm14, %v182_v55  }
  0xc4   :  { %v188_v62 = vpop.permute.xlu0 %187  }
  0xc5   :  { %190 = vst.msk [vmem:[#allocation0] sm:$0x1] %vm189_vm15, %v188_v62  }
  0xcc   :  { %v193_v63 = vld [vmem:[#allocation0] sm:$0x1] }
  0xcd   :  { %196 = vst [vmem:[%s400_s1] sm:$0x1] %v193_v63 }

// kernel: mynet_forward.1
= control target key start
LH: loop header
LB: loop body
LE: loop exit
PB: predicated region body
PF: predicated region fallthrough
CT: control target
= control target key end

     0   :  { %vm78_vm0 = vcmask 785408   ;;  %vm102_vm1 = vcmask 523264   ;;  %s237_s1 = inlined_call_operand.vmem [shape: f32[128,96], index: 1, kind: input, shape index: {}]   ;;  %s238_s3 = inlined_call_operand.vmem [shape: f32[96,64], index: 3, kind: input, shape index: {}]   ;;  %s239_s2 = inlined_call_operand.vmem [shape: f32[1,96], index: 2, kind: input, shape index: {}]   ;;  %s240_s0 = inlined_call_operand.vmem [shape: f32[8,128], index: 0, kind: input, shape index: {}]   ;;  %s241_s4 = inlined_call_operand.vmem [shape: f32[1,64], index: 4, kind: input, shape index: {}]   ;;  %s242_s5 = inlined_call_operand.vmem [shape: f32[8,64], index: 5, kind: output, shape index: {}]  }
   0x1   :  { %v36_v0 = vld [vmem:[%s237_s1 + $0x78] sm:$0xff]  ;;  %v35_v1 = vld [vmem:[%s237_s1 + $0x70] sm:$0xff]  ;;  %v34_v2 = vld [vmem:[%s237_s1 + $0x68] sm:$0xff] }
   0x2   :  { %41 = vmatpush.msra.mxu0 %v36_v0  ;;  %v33_v3 = vld [vmem:[%s237_s1 + $0x60] sm:$0xff]  ;;  %v73_v4 = vld [vmem:[%s238_s3 + $0x58] sm:$0xff]  ;;  %v72_v6 = vld [vmem:[%s238_s3 + $0x50] sm:$0xff] }
   0x3   :  { %v32_v5 = vld [vmem:[%s237_s1 + $0x58] sm:$0xff]  ;;  %86 = vmatpush.msra.mxu1 %v73_v4  ;;  %v71_v7 = vld [vmem:[%s238_s3 + $0x48] sm:$0xff]  ;;  %v31_v8 = vld [vmem:[%s237_s1 + $0x50] sm:$0xff] }
   0x4   :  { %42 = vmatpush.msra.mxu0 %v35_v1  ;;  %v70_v9 = vld [vmem:[%s238_s3 + $0x40] sm:$0xff]  ;;  %v30_v10 = vld [vmem:[%s237_s1 + $0x48] sm:$0xff]  ;;  %v69_v11 = vld [vmem:[%s238_s3 + $0x38] sm:$0xff] }
   0x5   :  { %87 = vmatpush.msra.mxu1 %v72_v6  ;;  %v29_v12 = vld [vmem:[%s237_s1 + $0x40] sm:$0xff]  ;;  %v68_v13 = vld [vmem:[%s238_s3 + $0x30] sm:$0xff]  ;;  %v28_v14 = vld [vmem:[%s237_s1 + $0x38] sm:$0xff] }
   0x6   :  { %43 = vmatpush.msra.mxu0 %v34_v2  ;;  %v67_v15 = vld [vmem:[%s238_s3 + $0x28] sm:$0xff]  ;;  %v27_v16 = vld [vmem:[%s237_s1 + $0x30] sm:$0xff]  ;;  %v66_v17 = vld [vmem:[%s238_s3 + $0x20] sm:$0xff] }
   0x7   :  { %88 = vmatpush.msra.mxu1 %v71_v7  ;;  %v26_v18 = vld [vmem:[%s237_s1 + $0x28] sm:$0xff]  ;;  %v65_v19 = vld [vmem:[%s238_s3 + $0x18] sm:$0xff]  ;;  %v25_v20 = vld [vmem:[%s237_s1 + $0x20] sm:$0xff] }
   0x8   :  { %44 = vmatpush.msra.mxu0 %v33_v3  ;;  %v24_v21 = vld [vmem:[%s237_s1 + $0x18] sm:$0xff]  ;;  %v23_v22 = vld [vmem:[%s237_s1 + $0x10] sm:$0xff]  ;;  %v22_v23 = vld [vmem:[%s237_s1 + $0x8] sm:$0xff] }
   0x9   :  { %89 = vmatpush.msra.mxu1 %v70_v9  ;;  %v21_v24 = vld [vmem:[%s237_s1] sm:$0xff]  ;;  %v64_v26 = vld [vmem:[%s238_s3 + $0x10] sm:$0xff]  ;;  %v63_v27 = vld [vmem:[%s238_s3 + $0x8] sm:$0xff] }
   0xa   :  { %45 = vmatpush.msra.mxu0 %v32_v5  ;;  %v20_v25 = vld [vmem:[%s240_s0] sm:$0xff] }
   0xb   :  { %90 = vmatpush.msra.mxu1 %v69_v11  ;;  %v62_v28 = vld [vmem:[%s238_s3] sm:$0xff] }
   0xc   :  { %46 = vmatpush.msra.mxu0 %v31_v8  ;;  %v109_v29 = vld [vmem:[%s239_s2] ss:$0 sm:$0xff] }
   0xd   :  { %91 = vmatpush.msra.mxu1 %v68_v13  ;;  %v110_v33 = vld [vmem:[%s241_s4] ss:$0 sm:$0xff] }
   0xe   :  { %47 = vmatpush.msra.mxu0 %v30_v10 }
   0xf   :  { %92 = vmatpush.msra.mxu1 %v67_v15 }
  0x10   :  { %48 = vmatpush.msra.mxu0 %v29_v12 }
  0x11   :  { %93 = vmatpush.msra.mxu1 %v66_v17 }
  0x12   :  { %49 = vmatpush.msra.mxu0 %v28_v14 }
  0x13   :  { %94 = vmatpush.msra.mxu1 %v65_v19 }
  0x14   :  { %50 = vmatpush.msra.mxu0 %v27_v16 }
  0x15   :  { %95 = vmatpush.msra.mxu1 %v64_v26 }
  0x16   :  { %51 = vmatpush.msra.mxu0 %v26_v18 }
  0x17   :  { %96 = vmatpush.msra.mxu1 %v63_v27 }
  0x18   :  { %52 = vmatpush.msra.mxu0 %v25_v20 }
  0x19   :  { %97 = vmatpush.msra.mxu1 %v62_v28 }
  0x1a   :  { %53 = vmatpush.msra.mxu0 %v24_v21 }
  0x1c   :  { %54 = vmatpush.msra.mxu0 %v23_v22 }
  0x1e   :  { %55 = vmatpush.msra.mxu0 %v22_v23 }
  0x20   :  { %56 = vmatpush.msra.mxu0 %v21_v24 }
  0x21   :  { %57 = vmatmul.f32.vlgmr.msra.gmra.mxu0 %v20_v25 }
  0x9e   :  { %v58_v30 = vpop.f32.mrf.mxu0 }
  0x9f   :  { %v59_v31 = vadd.f32 %v109_v29, %v58_v30 }
  0xa1   :  { %v61_v32 = vmax.f32 %v59_v31, 0.0 }
  0xa3   :  { %108 = vmatmul.msk.f32.vlgmr.msra.gmra.mxu1 %vm78_vm0, %v61_v32 }
 0x120   :  { %v99_v34 = vpop.f32.mrf.mxu1 }
 0x121   :  { %v100_v35 = vadd.f32 %v110_v33, %v99_v34 }
 0x123   :  { %103 = vst.msk [vmem:[%s242_s5] sm:$0xff] %vm102_vm1, %v100_v35 }

</bundles_post_ra>
